<compile_context>
chip_gen: v7x
topology: tpu7x:2x2x1
jax: 0.10.0
libtpu: 0.0.40
codegen_flags: <defaults>
</compile_context>

<pallas_src>
import functools
import math

import jax
import jax.numpy as jnp
from jax.experimental import pallas as pl
from jax.experimental.pallas import tpu as pltpu

_LANE = 128
_SUBLANE = 8


def _round_up(v, m):
    return (v + m - 1) // m * m


# ---------------------------------------------------------------------------
# Activations (VPU / EUP inside the kernel)
# ---------------------------------------------------------------------------
def _act(name, x):
    if name == "tanh":
        return jnp.tanh(x)
    if name == "relu":
        return jnp.maximum(x, 0.0)
    if name == "sigmoid":
        return jax.nn.sigmoid(x)
    if name == "leakyrelu":
        return jnp.maximum(x, 0.01 * x)  # nn.LeakyReLU default slope, max form (2 VALU ops)
    raise ValueError(name)


# ---------------------------------------------------------------------------
# Kernels
# ---------------------------------------------------------------------------
def _single_linear_kernel(k_ref, x_ref, w_ref, b_ref, o_ref, *, non_linearity, act_first):
    # w_ref is pre-transposed: (in_pad, out_pad) -> contraction is a plain x @ w (MXU).
    del k_ref  # only used by the index_maps for block selection
    x = x_ref[...]
    w = w_ref[...]
    b = b_ref[...].astype(jnp.float32)  # (1, out_pad) -> broadcasts over batch tile
    if act_first:
        # 'inside' (-1):  out = act(x) @ w + b
        o = jnp.dot(_act(non_linearity, x).astype(w.dtype), w,
                    preferred_element_type=jnp.float32) + b
    else:
        # 'outside' (0):  out = act(x @ w + b)
        o = _act(non_linearity,
                 jnp.dot(x, w, preferred_element_type=jnp.float32) + b)
    o_ref[...] = o.astype(o_ref.dtype)


def _bottleneck_kernel(k_ref, x_ref, w1_ref, b1_ref, w2_ref, b2_ref, o_ref, *, non_linearity):
    # 'bottleneck' (1):  h = act(x @ w1 + b1);  out = h @ w2 + b2
    del k_ref
    x = x_ref[...]
    h = _act(non_linearity,
             jnp.dot(x, w1_ref[...], preferred_element_type=jnp.float32)
             + b1_ref[...].astype(jnp.float32))
    # h stays f32 here when the storage dtype is f32; only cast down for bf16 weights.
    o = (jnp.dot(h.astype(w2_ref.dtype), w2_ref[...], preferred_element_type=jnp.float32)
         + b2_ref[...].astype(jnp.float32))
    o_ref[...] = o.astype(o_ref.dtype)


# ---------------------------------------------------------------------------
# Tiling / compiler-param helpers
# ---------------------------------------------------------------------------
def _choose_batch_tiling(B):
    """Batch tile (multiple of 8), padded batch, and number of grid steps."""
    b8 = _round_up(B, _SUBLANE)
    tb = min(512, b8)                       # big tiles amortize per-grid-step overhead
    if b8 >= 2 * _SUBLANE:
        # Guarantee >= 2 grid steps so dimension_semantics=("parallel",) can actually
        # split the batch across the two TensorCores on v7x.
        tb = min(tb, _round_up(pl.cdiv(b8, 2), _SUBLANE))
    b_pad = _round_up(b8, tb)
    return tb, b_pad, b_pad // tb


def _compiler_params(vmem_bytes_est):
    if vmem_bytes_est > 12 * 1024 * 1024:
        # v5e's default scoped VMEM limit is only 16 MiB; raise it when the working set
        # grows, capped below v7x's 64 MiB physical VMEM.
        limit = int(min(2 * vmem_bytes_est, 60 * 1024 * 1024))
        return pltpu.CompilerParams(dimension_semantics=("parallel",),
                                    vmem_limit_bytes=limit)
    return pltpu.CompilerParams(dimension_semantics=("parallel",))


def _maybe_pad(x, b_pad, feat_pad):
    B, F = x.shape
    if (B, F) == (b_pad, feat_pad):
        return x
    return jnp.zeros((b_pad, feat_pad), x.dtype).at[:B, :F].set(x)


# ---------------------------------------------------------------------------
# Jitted per-step forward paths (module-level; config baked in via functools.partial)
# ---------------------------------------------------------------------------
def _single_forward(k_arr, x, w_stk, b_stk, *, non_linearity, act_first, out_dim):
    B, _ = x.shape
    in_pad, out_pad = w_stk.shape[1], w_stk.shape[2]
    tb, b_pad, nb = _choose_batch_tiling(B)
    xp = _maybe_pad(x, b_pad, in_pad)

    itemsize = jnp.dtype(x.dtype).itemsize
    vmem_est = itemsize * (2 * tb * (in_pad + out_pad)            # x/out double buffers
                           + 2 * (in_pad * out_pad + out_pad))    # weight/bias buffers
    # NOTE: weights are never re-fetched across the batch grid (constant index_map);
    # pipeline_mode=pl.Buffered(1) would halve their VMEM footprint on v7x for very
    # large hidden dims, but is negligible at these sizes so it is left at the default.

    kernel = functools.partial(_single_linear_kernel,
                               non_linearity=non_linearity, act_first=act_first)
    grid_spec = pltpu.PrefetchScalarGridSpec(
        num_scalar_prefetch=1,
        grid=(nb,),
        in_specs=[
            pl.BlockSpec((tb, in_pad), lambda i, kk: (i, 0)),
            pl.BlockSpec((None, in_pad, out_pad), lambda i, kk: (kk[0], 0, 0)),
            pl.BlockSpec((None, 1, out_pad), lambda i, kk: (kk[0], 0, 0)),
        ],
        out_specs=pl.BlockSpec((tb, out_pad), lambda i, kk: (i, 0)),
    )
    cost = pl.CostEstimate(
        flops=2 * b_pad * in_pad * out_pad,
        transcendentals=(b_pad * out_pad if non_linearity in ("tanh", "sigmoid") else 0),
        bytes_accessed=itemsize * (b_pad * (in_pad + out_pad)
                                   + in_pad * out_pad + out_pad),
    )
    out = pl.pallas_call(
        kernel,
        out_shape=jax.ShapeDtypeStruct((b_pad, out_pad), x.dtype),
        grid_spec=grid_spec,
        compiler_params=_compiler_params(vmem_est),
        cost_estimate=cost,
    )(k_arr, xp, w_stk, b_stk)
    if (b_pad, out_pad) != (B, out_dim):
        out = out[:B, :out_dim]
    return out


def _bottleneck_forward(k_arr, x, w1_stk, b1_stk, w2_stk, b2_stk, *, non_linearity, out_dim):
    B, _ = x.shape
    in_pad, hid_pad = w1_stk.shape[1], w1_stk.shape[2]
    tb, b_pad, nb = _choose_batch_tiling(B)
    xp = _maybe_pad(x, b_pad, in_pad)

    itemsize = jnp.dtype(x.dtype).itemsize
    vmem_est = itemsize * (4 * tb * in_pad + tb * hid_pad
                           + 2 * (2 * in_pad * hid_pad + in_pad + hid_pad))

    kernel = functools.partial(_bottleneck_kernel, non_linearity=non_linearity)
    grid_spec = pltpu.PrefetchScalarGridSpec(
        num_scalar_prefetch=1,
        grid=(nb,),
        in_specs=[
            pl.BlockSpec((tb, in_pad), lambda i, kk: (i, 0)),
            pl.BlockSpec((None, in_pad, hid_pad), lambda i, kk: (kk[0], 0, 0)),
            pl.BlockSpec((None, 1, hid_pad), lambda i, kk: (kk[0], 0, 0)),
            pl.BlockSpec((None, hid_pad, in_pad), lambda i, kk: (kk[0], 0, 0)),
            pl.BlockSpec((None, 1, in_pad), lambda i, kk: (kk[0], 0, 0)),
        ],
        out_specs=pl.BlockSpec((tb, in_pad), lambda i, kk: (i, 0)),
    )
    cost = pl.CostEstimate(
        flops=4 * b_pad * in_pad * hid_pad,
        transcendentals=(b_pad * hid_pad if non_linearity in ("tanh", "sigmoid") else 0),
        bytes_accessed=itemsize * (2 * b_pad * in_pad + 2 * in_pad * hid_pad
                                   + in_pad + hid_pad),
    )
    out = pl.pallas_call(
        kernel,
        out_shape=jax.ShapeDtypeStruct((b_pad, in_pad), x.dtype),
        grid_spec=grid_spec,
        compiler_params=_compiler_params(vmem_est),
        cost_estimate=cost,
    )(k_arr, xp, w1_stk, b1_stk, w2_stk, b2_stk)
    if (b_pad, in_pad) != (B, out_dim):
        out = out[:B, :out_dim]
    return out


# ---------------------------------------------------------------------------
# Module
# ---------------------------------------------------------------------------
_ACTIVATIONS = ("tanh", "relu", "sigmoid", "leakyrelu")
_ARCHITECTURES = {"inside": -1, "outside": 0, "bottleneck": 1}


class Dynamics:
    """JAX/Pallas port of neural_odes.Dynamics (forward pass only)."""

    def __init__(self, key, data_dim, hidden_dim, augment_dim=0,
                 non_linearity="tanh", architecture="inside",
                 T=10, time_steps=10, dtype=jnp.float32):
        if non_linearity not in _ACTIVATIONS or architecture not in _ARCHITECTURES:
            raise ValueError("Activation function or architecture not found.")
        self.augment_dim = augment_dim
        self.data_dim = data_dim
        self.input_dim = data_dim + augment_dim
        self.hidden_dim = hidden_dim
        self.non_linearity = non_linearity
        self.architecture = _ARCHITECTURES[architecture]
        self.T = T
        self.time_steps = time_steps
        self.dtype = dtype

        def linear_init(k, out_f, in_f):
            # PyTorch nn.Linear default: U(-1/sqrt(in_f), 1/sqrt(in_f)) for W and b
            kw, kb = jax.random.split(k)
            bound = 1.0 / math.sqrt(in_f)
            w = jax.random.uniform(kw, (out_f, in_f), dtype, -bound, bound)
            b = jax.random.uniform(kb, (out_f,), dtype, -bound, bound)
            return w, b

        def pack(params, in_pad, out_pad):
            # (out,in) torch-layout params -> stacked, pre-transposed (in_pad,out_pad),
            # ZERO-padded: padded rows/cols contribute exactly nothing (this invariant
            # is what makes the padded activation lanes harmless, incl. sigmoid(0)=0.5).
            ws, bs = [], []
            for w, b in params:
                wt = jnp.zeros((in_pad, out_pad), dtype).at[:w.shape[1], :w.shape[0]].set(w.T)
                bp = jnp.zeros((1, out_pad), dtype).at[0, :b.shape[0]].set(b)
                ws.append(wt)
                bs.append(bp)
            return jnp.stack(ws), jnp.stack(bs)

        keys = jax.random.split(key, 2 * time_steps)
        self._hid_pad = _round_up(hidden_dim, _LANE)
        self._in_pad = _round_up(self.input_dim, _LANE)

        if self.architecture > 0:
            self._fc1_raw = [linear_init(keys[i], hidden_dim, self.input_dim)
                             for i in range(time_steps)]
            self._fc3_raw = [linear_init(keys[time_steps + i], self.input_dim, hidden_dim)
                             for i in range(time_steps)]
            self.w1_stk, self.b1_stk = pack(self._fc1_raw, self._in_pad, self._hid_pad)
            self.w2_stk, self.b2_stk = pack(self._fc3_raw, self._hid_pad, self._in_pad)
            self._step = jax.jit(functools.partial(
                _bottleneck_forward,
                non_linearity=self.non_linearity,
                out_dim=self.input_dim))
        else:
            self._fc2_raw = [linear_init(keys[i], hidden_dim, hidden_dim)
                             for i in range(time_steps)]
            self.w_stk, self.b_stk = pack(self._fc2_raw, self._hid_pad, self._hid_pad)
            self._step = jax.jit(functools.partial(
                _single_forward,
                non_linearity=self.non_linearity,
                act_first=(self.architecture < 0),
                out_dim=self.hidden_dim))

    # -- timestep index -------------------------------------------------------
    def _step_index(self, t):
        dt = self.T / self.time_steps
        if isinstance(t, (int, float)):
            # Same truncation as the original int(t/dt), clamped so t == T is in range.
            k = min(max(int(t / dt), 0), self.time_steps - 1)
            return jnp.full((1,), k, dtype=jnp.int32)
        # Traced t (e.g. from a jitted ODE solver): compute k on device.
        t_arr = jnp.asarray(t, jnp.float32).reshape(())
        k = jnp.clip((t_arr / dt).astype(jnp.int32), 0, self.time_steps - 1)
        return k.reshape(1)

    # -- forward --------------------------------------------------------------
    def __call__(self, t, x):
        k_arr = self._step_index(t)
        if self.architecture > 0:
            return self._step(k_arr, x, self.w1_stk, self.b1_stk, self.w2_stk, self.b2_stk)
        return self._step(k_arr, x, self.w_stk, self.b_stk)

    # -- pure-JAX reference (unpadded weights) --------------------------------
    def reference(self, t, x):
        dt = self.T / self.time_steps
        k = min(max(int(t / dt), 0), self.time_steps - 1)
        act = lambda v: _act(self.non_linearity, v)
        if self.architecture < 1:
            w_t, b_t = self._fc2_raw[k]
            if self.architecture < 0:
                return act(x) @ w_t.T + b_t
            return act(x @ w_t.T + b_t)
        w1_t, b1_t = self._fc1_raw[k]
        w2_t, b2_t = self._fc3_raw[k]
        h = act(x @ w1_t.T + b1_t)
        return h @ w2_t.T + b2_t


# ---------------------------------------------------------------------------
# Main
# ---------------------------------------------------------------------------
if __name__ == "__main__":
    key = jax.random.PRNGKey(0)
    k_param, k_x = jax.random.split(key)

    batch, data_dim, hidden_dim = 8, 32, 32
    t = 3.7  # dt = T/time_steps = 1.0 -> k = 3
    ok = True

    # 'inside' / 'outside' architectures (single Linear per time step); input is hidden_dim wide
    x = jax.random.normal(k_x, (batch, hidden_dim), jnp.float32)
    for arch in ("inside", "outside"):
        for act_name in ("tanh", "sigmoid"):
            dyn = Dynamics(k_param, data_dim, hidden_dim, augment_dim=0,
                           non_linearity=act_name, architecture=arch,
                           T=10, time_steps=10)
            out = jax.block_until_ready(dyn(t, x))
            ref = dyn.reference(t, x)
            ok &= bool(jnp.allclose(out, ref, atol=1e-5, rtol=1e-5))

    # 'bottleneck' architecture (two Linears per time step); input dim = data_dim + augment_dim
    dyn_b = Dynamics(k_param, data_dim, hidden_dim, augment_dim=0,
                     non_linearity="tanh", architecture="bottleneck",
                     T=10, time_steps=10)
    xb = jax.random.normal(jax.random.PRNGKey(1), (batch, dyn_b.input_dim), jnp.float32)
    out_b = jax.block_until_ready(dyn_b(t, xb))
    ref_b = dyn_b.reference(t, xb)
    ok &= bool(jnp.allclose(out_b, ref_b, atol=1e-5, rtol=1e-5))

    # Non-multiple-of-8 batch exercises padding + the multi-tile (>=2 grid steps) path
    x13 = jax.random.normal(jax.random.PRNGKey(2), (13, hidden_dim), jnp.float32)
    dyn_o = Dynamics(k_param, data_dim, hidden_dim, non_linearity="leakyrelu",
                     architecture="outside", T=10, time_steps=10)
    out13 = jax.block_until_ready(dyn_o(t, x13))
    ok &= bool(jnp.allclose(out13, dyn_o.reference(t, x13), atol=1e-5, rtol=1e-5))

    # Right-endpoint evaluation (t == T) must not blow up (clamped k)
    out_end = jax.block_until_ready(dyn_o(10.0, x13))
    ok &= bool(jnp.allclose(out_end, dyn_o.reference(10.0, x13), atol=1e-5, rtol=1e-5))

    # Traced-t path (k computed on device, as a jitted ODE solver would supply it)
    out_tr = jax.block_until_ready(dyn_o(jnp.float32(3.7), x13))
    ok &= bool(jnp.allclose(out_tr, dyn_o.reference(3.7, x13), atol=1e-5, rtol=1e-5))

    if ok:
        print("KERNEL_OK")
</pallas_src>

<mosaic_0001>
module attributes {stable_mosaic.version = 11 : i64} {
  func.func @_single_linear_kernel(%arg0: i32, %arg1: memref<1xi32, #tpu.memory_space<smem>>, %arg2: memref<8x128xf32, #tpu.memory_space<vmem>>, %arg3: memref<1x128x128xf32, #tpu.memory_space<vmem>>, %arg4: memref<1x1x128xf32, #tpu.memory_space<vmem>>, %arg5: memref<8x128xf32, #tpu.memory_space<vmem>>) attributes {dimension_semantics = [#tpu.dimension_semantics<parallel>], iteration_bounds = array<i64: 1>, scalar_prefetch = 1 : i64, scratch_operands = 0 : i64, tpu.core_type = #tpu.core_type<tc>, window_params = [{transform_indices = @transform_0, window_bounds = array<i64: 8, 128>}, {transform_indices = @transform_1, window_bounds = array<i64: 1, 128, 128>}, {transform_indices = @transform_2, window_bounds = array<i64: 1, 1, 128>}, {transform_indices = @transform_3, window_bounds = array<i64: 8, 128>}]} {
    %c0 = arith.constant 0 : index
    %c0_0 = arith.constant 0 : index
    %0 = vector.load %arg2[%c0, %c0_0] : memref<8x128xf32, #tpu.memory_space<vmem>>, vector<8x128xf32>
    %c0_1 = arith.constant 0 : index
    %c0_2 = arith.constant 0 : index
    %c0_3 = arith.constant 0 : index
    %1 = vector.load %arg3[%c0_1, %c0_2, %c0_3] : memref<1x128x128xf32, #tpu.memory_space<vmem>>, vector<1x128x128xf32>
    %2 = vector.shape_cast %1 : vector<1x128x128xf32> to vector<128x128xf32>
    %c0_4 = arith.constant 0 : index
    %c0_5 = arith.constant 0 : index
    %c0_6 = arith.constant 0 : index
    %3 = vector.load %arg4[%c0_4, %c0_5, %c0_6] : memref<1x1x128xf32, #tpu.memory_space<vmem>>, vector<1x1x128xf32>
    %4 = vector.shape_cast %3 : vector<1x1x128xf32> to vector<1x128xf32>
    %5 = math.tanh %0 : vector<8x128xf32>
    %cst = arith.constant dense<0.000000e+00> : vector<8x128xf32>
    %6 = tpu.matmul %5, %2, %cst {dimension_numbers = #tpu.dot_dimension_numbers<[1], [0], [0], [1], [0, 0, 1, 1], [], []>} : vector<8x128xf32>, vector<128x128xf32>, vector<8x128xf32> -> vector<8x128xf32>
    %7 = vector.broadcast %4 : vector<1x128xf32> to vector<8x128xf32>
    %8 = arith.addf %6, %7 : vector<8x128xf32>
    %c0_7 = arith.constant 0 : index
    %c0_8 = arith.constant 0 : index
    %9 = vector.load %arg5[%c0_7, %c0_8] : memref<8x128xf32, #tpu.memory_space<vmem>>, vector<8x128xf32>
    tpu.vector_store %arg5[%c0_7, %c0_8], %8 {strides = array<i32>} : memref<8x128xf32, #tpu.memory_space<vmem>>, vector<8x128xf32>,
    return
  }
  func.func @transform_0(%arg0: i32, %arg1: memref<1xi32, #tpu.memory_space<smem>>) -> (i32, i32) {
    %c0_i32 = arith.constant 0 : i32
    %c0_i32_0 = arith.constant 0 : i32
    return %arg0, %c0_i32 : i32, i32
  }
  func.func @transform_1(%arg0: i32, %arg1: memref<1xi32, #tpu.memory_space<smem>>) -> (i32, i32, i32) {
    %c0 = arith.constant 0 : index
    %0 = memref.load %arg1[%c0] : memref<1xi32, #tpu.memory_space<smem>>
    %c0_i32 = arith.constant 0 : i32
    %c0_i32_0 = arith.constant 0 : i32
    %c0_i32_1 = arith.constant 0 : i32
    return %0, %c0_i32, %c0_i32_0 : i32, i32, i32
  }
  func.func @transform_2(%arg0: i32, %arg1: memref<1xi32, #tpu.memory_space<smem>>) -> (i32, i32, i32) {
    %c0 = arith.constant 0 : index
    %0 = memref.load %arg1[%c0] : memref<1xi32, #tpu.memory_space<smem>>
    %c0_i32 = arith.constant 0 : i32
    %c0_i32_0 = arith.constant 0 : i32
    %c0_i32_1 = arith.constant 0 : i32
    return %0, %c0_i32, %c0_i32_0 : i32, i32, i32
  }
  func.func @transform_3(%arg0: i32, %arg1: memref<1xi32, #tpu.memory_space<smem>>) -> (i32, i32) {
    %c0_i32 = arith.constant 0 : i32
    %c0_i32_0 = arith.constant 0 : i32
    return %arg0, %c0_i32 : i32, i32
  }
}

</mosaic_0001>

<bundles_post_ra>
// kernel: _single_forward.1
= control target key start
LH: loop header
LB: loop body
LE: loop exit
PB: predicated region body
PF: predicated region fallthrough
CT: control target
= control target key end

     0   :  { %10 = vsyncpa [#allocation5], 0  ;;  %s373_s0 = inlined_call_operand.<no memory space> [shape: s32[1], index: 0, kind: input, shape index: {}]   ;;  %s374_s1 = inlined_call_operand.vmem [shape: f32[8,128], index: 1, kind: input, shape index: {}]   ;;  %s375_s2 = inlined_call_operand.hbm [shape: f32[10,128,128], index: 2, kind: input, shape index: {}]   ;;  %s376_s3 = inlined_call_operand.vmem [shape: f32[10,1,128], index: 3, kind: input, shape index: {}]   ;;  %s377_s4 = inlined_call_operand.hbm [shape: f32[8,128], index: 4, kind: output, shape index: {}]  }
   0x1   :  { %11 = vsyncpa [#allocation6], 0  ;;  %s169_s17 = sshll.u32 %s373_s0, 11  ;;  %s305_s21 = smov [#allocation4]  }
   0x2   :  { %s22_s20 = scalar_lea.hbm %s375_s2, %s169_s17  ;;  %s23_s22 = sshll.u32 %s305_s21, 4  ;;  %s24_s22 = int_to_ptr.vmem [resolvable:$true] %s23_s22 }
   0x3   :  { %s255_s23 = scalar_lea.hbm %s22_s20, 2048  ;;  %s257_s26 = scalar_lea.hbm %s375_s2, 20480 }
   0x4   :  { %p256_p0 = scmp.ne.s32.totalorder %s22_s20, %s255_s23  ;;  %p258_p1 = scmp.lt.u32.totalorder %s22_s20, %s375_s2 }
   0x5   :  { %p259_p2 = scmp.lt.u32.totalorder %s257_s26, %s255_s23  ;;  %p261_p4 = scmp.lt.u32.totalorder %s255_s23, %s22_s20 }
   0x7   :  { %p260_p3 = por %p259_p2, %p258_p1 }
   0x9   :  { %p262_p5 = por %p261_p4, %p260_p3 }
   0xb   :  { %p263_p6 = pnand %p262_p5, %p256_p0 }
   0xd   :  { %266 = shalt.err (!%p263_p6)
}
   0xe   :  { %s267_s29 = scalar_lea.vmem %s24_s22, 2048  ;;  %p272_p8 = scmp.lt.s32.totalorder %s24_s22, %s24_s22 }
   0xf   :  { %p268_p7 = scmp.ne.s32.totalorder %s24_s22, %s267_s29  ;;  %p273_p9 = scmp.lt.s32.totalorder %s267_s29, %s267_s29 }
  0x11   :  { %p274_p10 = por %p273_p9, %p272_p8 }
  0x13   :  { %p275_p11 = pnand %p274_p10, %p268_p7 }
  0x15   :  { %278 = shalt.err (!%p275_p11)
}
  0x16   :  { %s306_s30 = smov 128   ;;  %s307_s5 = smov 8  }
  0x17   :  { %29 = dma.hbm_to_vmem [thread:$0]  %s22_s20, 2048, %s24_s22, [#allocation5], %s306_s30, %s306_s30, %s307_s5  }
  0x18   :  { %301 = dma.done.wait [#allocation5], 2048  }
  0x19   :  { %302 = vsyncadd [#allocation5], 4294965248  ;;  %v308_v0 = vmov 0.0|0.0   ;;  %vm309_vm0 = vmmov 0   ;;  %v310_v1 = vmov 0.0   ;;  %v51_v2 = vld [vmem:[#allocation4] sm:$0xff] }
  0x1a   :  { %222 = vmatprep.subr.bf16.mxu0 %v308_v0  ;;  %219 = vmatprep.mubr.msk.f32.mxu0 %vm309_vm0, %v310_v1  ;;  %v52_v3 = vld [vmem:[#allocation4 + $0x8] sm:$0xff]  ;;  %v53_v4 = vld [vmem:[#allocation4 + $0x10] sm:$0xff]  ;;  %v54_v6 = vld [vmem:[#allocation4 + $0x18] sm:$0xff]  ;;  %p46_p12 = scmp.lt.s32.totalorder %s373_s0, 9  ;;  %s311_s13 = smov [#allocation7]  }
  0x1b   :  { %v223_v5 = vpack.c.bf16 %v52_v3, %v51_v2  ;;  %v226_v7 = vpack.c.bf16 %v54_v6, %v53_v4  ;;  %v55_v8 = vld [vmem:[#allocation4 + $0x20] sm:$0xff]  ;;  %v56_v9 = vld [vmem:[#allocation4 + $0x28] sm:$0xff]  ;;  %v57_v11 = vld [vmem:[#allocation4 + $0x30] sm:$0xff]  ;;  %s152_s14 = sshll.u32 %s311_s13, 4  ;;  %s153_s14 = int_to_ptr.vmem [resolvable:$true] %s152_s14 }
  0x1c   :  { %v229_v10 = vpack.c.bf16 %v56_v9, %v55_v8  ;;  %v58_v12 = vld [vmem:[#allocation4 + $0x38] sm:$0xff]  ;;  %v59_v14 = vld [vmem:[#allocation4 + $0x40] sm:$0xff]  ;;  %v60_v15 = vld [vmem:[#allocation4 + $0x48] sm:$0xff]  ;;  %s379_s0 = smov (!%p46_p12, %s373_s0), 9  ;;  %s279_s15 = scalar_lea.vmem %s153_s14, 128 }
  0x1d   :  { %224 = vmatpush3.bf16.msra.mxu0 %v223_v5  ;;  %v232_v13 = vpack.c.bf16 %v58_v12, %v57_v11  ;;  %v235_v16 = vpack.c.bf16 %v60_v15, %v59_v14  ;;  %v61_v17 = vld [vmem:[#allocation4 + $0x50] sm:$0xff]  ;;  %v62_v18 = vld [vmem:[#allocation4 + $0x58] sm:$0xff]  ;;  %v50_v19 = vld [vmem:[%s374_s1] sm:$0xff]  ;;  %s48_s12 = scalar_lea.vmem %s376_s3, %s379_s0  ;;  %p280_p13 = scmp.ne.s32.totalorder %s153_s14, %s279_s15 }
  0x1e   :  { %225 = vmatprep.subr.bf16.mxu0 %v308_v0  ;;  %v238_v20 = vpack.c.bf16 %v62_v18, %v61_v17  ;;  %v63_v21 = vld [vmem:[#allocation4 + $0x60] sm:$0xff]  ;;  %v64_v22 = vld [vmem:[#allocation4 + $0x68] sm:$0xff]  ;;  %253 = vtanh.f32 %v50_v19  ;;  %v65_v24 = vld [vmem:[#allocation4 + $0x70] sm:$0xff]  ;;  %p284_p0 = scmp.lt.s32.totalorder %s153_s14, %s153_s14  ;;  %p285_p1 = scmp.lt.s32.totalorder %s279_s15, %s279_s15 }
  0x1f   :  { %v241_v23 = vpack.c.bf16 %v64_v22, %v63_v21  ;;  %v66_v25 = vld [vmem:[#allocation4 + $0x78] sm:$0xff]  ;;  %v168_v28 = vld [vmem:[%s48_s12] ss:$0 sm:$0xff] }
  0x20   :  { %v244_v26 = vpack.c.bf16 %v66_v25, %v65_v24  ;;  %p286_p2 = por %p285_p1, %p284_p0 }
  0x21   :  { %227 = vmatpush3.bf16.msra.mxu0 %v226_v7 }
  0x22   :  { %228 = vmatprep.subr.bf16.mxu0 %v308_v0  ;;  %p287_p3 = pnand %p286_p2, %p280_p13 }
  0x25   :  { %230 = vmatpush3.bf16.msra.mxu0 %v229_v10 }
  0x26   :  { %231 = vmatprep.subr.bf16.mxu0 %v308_v0 }
  0x28   :  { %v254_v27 = vpop.eup %253 }
  0x29   :  { %233 = vmatpush3.bf16.msra.mxu0 %v232_v13 }
  0x2a   :  { %234 = vmatprep.subr.bf16.mxu0 %v308_v0 }
  0x2d   :  { %236 = vmatpush3.bf16.msra.mxu0 %v235_v16 }
  0x2e   :  { %237 = vmatprep.subr.bf16.mxu0 %v308_v0 }
  0x31   :  { %239 = vmatpush3.bf16.msra.mxu0 %v238_v20 }
  0x32   :  { %240 = vmatprep.subr.bf16.mxu0 %v308_v0 }
  0x35   :  { %242 = vmatpush3.bf16.msra.mxu0 %v241_v23 }
  0x36   :  { %243 = vmatprep.subr.bf16.mxu0 %v308_v0 }
  0x39   :  { %245 = vmatpush3.bf16.msra.mxu0 %v244_v26 }
  0x3c   :  { %220 = vmatmul.mubr.f32.vlgmr.msra.gmra.mrb[0].mxu0 %v254_v27 }
 0x10f   :  { %v141_v29 = vpop.f32.mrb[0].mxu0 }
 0x110   :  { %v142_v30 = vadd.f32 %v168_v28, %v141_v29  ;;  %v221_v31 = vpop.f32.mrb[1].mxu0 }
 0x112   :  { %145 = vst [vmem:[#allocation7] sm:$0xff] %v142_v30 }
 0x113   :  { %290 = shalt.err (!%p287_p3)
}
 0x114   :  { %s291_s18 = scalar_lea.hbm %s377_s4, 128 }
 0x115   :  { %p292_p4 = scmp.ne.s32.totalorder %s377_s4, %s291_s18  ;;  %p295_p5 = scmp.lt.u32.totalorder %s291_s18, %s377_s4 }
 0x117   :  { %p297_p6 = pnand %p295_p5, %p292_p4 }
 0x119   :  { %300 = shalt.err (!%p297_p6)
}
 0x11a   :  { %155 = dma.vmem_to_hbm [thread:$0]  %s153_s14, 128, %s377_s4, [#allocation6]  }
 0x11b   :  { %303 = dma.done.wait [#allocation6], 128  }
 0x11c   :  { %304 = vsyncadd [#allocation6], 4294967168 }
 0x11d   :  { %159 = vsyncpa [#allocation5], 1 }
 0x11e   :  { %160 = vsyncpa [#allocation6], 1 }

</bundles_post_ra>
